<compile_context>
chip_gen: v7x
topology: tpu7x:2x2x1
jax: 0.10.0
libtpu: 0.0.40
codegen_flags: <defaults>
</compile_context>

<pallas_src>
import functools

import numpy as np
import jax
import jax.numpy as jnp
from jax.experimental import pallas as pl
from jax.experimental.pallas import tpu as pltpu

GRID_LS = 32
HIDDEN = 64
NGR = NGZ = 16
OUT = NGR * NGZ  # 256


def _cdiv(a, b):
    return -(-a // b)


def _round_up(x, m):
    return _cdiv(x, m) * m


def flux_head_kernel(betas_ref,                                    # (2,) scalar prefetch (SMEM)
                     x_ref, w1_ref, b1_ref, w2_ref, b2_ref,        # VMEM tiles
                     o_ref,
                     *, approx):
    beta1 = betas_ref[0]
    beta2 = betas_ref[1]

    def swish(t, beta):
        # x * sigmoid(beta * x), with the sigmoid routed through the EUP:
        # exp and (approximate) reciprocal ride the otherwise-idle EUP slot,
        # freeing VALU slots on v7x where HBM and VPU start co-limiting.
        return t * pl.reciprocal(1.0 + jnp.exp(-beta * t), approx=approx)

    x = x_ref[...].astype(jnp.float32)

    # Linear(32 -> 64) + swish(beta1)   (f32 operands: FLOPs never bind here)
    h = jnp.dot(x, w1_ref[...], preferred_element_type=jnp.float32) + b1_ref[...]
    h = swish(h, beta1)

    # Linear(64 -> 256) + swish(beta2)
    y = jnp.dot(h, w2_ref[...], preferred_element_type=jnp.float32) + b2_ref[...]
    y = swish(y, beta2)

    o_ref[...] = y.astype(o_ref.dtype)


def flux_head_forward(gr, w1, b1, beta1, w2, b2, beta2, *,
                      block_rows=4096, out_dtype=jnp.float32,
                      approx_sigmoid=True):
    """gr: (B, 32). Returns (B, 1, 16, 16) in `out_dtype` (matches torch .view).

    out_dtype=jnp.bfloat16 halves the dominant HBM writeback at the cost of
    diverging from the torch f32 numerics; default stays float32.
    """
    gr = jnp.asarray(gr, jnp.float32).reshape(-1, GRID_LS)
    B = gr.shape[0]
    out_itemsize = np.dtype(out_dtype).itemsize
    # Sublane packing of the output dtype: f32 -> 8 rows, bf16 -> 16, fp8 -> 32.
    row_align = max(8, 32 // out_itemsize)

    # ---- batch-tile selection -----------------------------------------------
    # Even block count (>= 2 whenever B is non-trivial) so the "parallel"
    # batch axis shards across both v7x TensorCores; each block <= block_rows
    # rows and a multiple of row_align.  No wrapper padding: the final block
    # may be ragged and Pallas masks its writeback.
    block_rows = max(int(block_rows), row_align)
    n_target = 2 * _cdiv(B, 2 * block_rows)
    TB = _round_up(_cdiv(B, n_target), row_align)
    TB = min(TB, _round_up(min(B, block_rows), row_align))
    n_blocks = _cdiv(B, TB)

    betas = jnp.stack([jnp.asarray(beta1, jnp.float32),
                       jnp.asarray(beta2, jnp.float32)])
    w1 = jnp.asarray(w1, jnp.float32)
    w2 = jnp.asarray(w2, jnp.float32)
    b1_row = jnp.asarray(b1, jnp.float32).reshape(1, HIDDEN)
    b2_row = jnp.asarray(b2, jnp.float32).reshape(1, OUT)

    grid_spec = pltpu.PrefetchScalarGridSpec(
        num_scalar_prefetch=1,                  # betas -> SMEM
        grid=(n_blocks,),
        in_specs=[
            pl.BlockSpec((TB, GRID_LS), lambda i, betas: (i, 0)),      # x tile
            pl.BlockSpec((GRID_LS, HIDDEN), lambda i, betas: (0, 0)),  # w1 (VMEM-resident)
            pl.BlockSpec((1, HIDDEN), lambda i, betas: (0, 0)),        # b1 (resident)
            pl.BlockSpec((HIDDEN, OUT), lambda i, betas: (0, 0)),      # w2 (resident)
            pl.BlockSpec((1, OUT), lambda i, betas: (0, 0)),           # b2 (resident)
        ],
        out_specs=pl.BlockSpec((TB, OUT), lambda i, betas: (i, 0)),    # lane-dense (256)
    )

    weight_bytes = 4 * (GRID_LS * HIDDEN + HIDDEN + HIDDEN * OUT + OUT)
    cost = pl.CostEstimate(
        flops=2 * B * (GRID_LS * HIDDEN + HIDDEN * OUT),
        transcendentals=B * (HIDDEN + OUT),
        bytes_accessed=B * GRID_LS * 4 + B * OUT * out_itemsize + weight_bytes,
    )

    # VMEM budget: double-buffered x/out tiles + materialized h/y temporaries
    # + (double-buffered) weights, with ~1.5x headroom for Mosaic temporaries.
    vmem_est = (2 * TB * GRID_LS * 4
                + 2 * TB * OUT * out_itemsize
                + TB * (HIDDEN + 2 * OUT) * 4
                + 2 * weight_bytes)
    vmem_limit = min(64 << 20, max(32 << 20, int(1.5 * vmem_est) + (1 << 20)))

    y = pl.pallas_call(
        functools.partial(flux_head_kernel, approx=approx_sigmoid),
        out_shape=jax.ShapeDtypeStruct((B, OUT), out_dtype),
        grid_spec=grid_spec,
        compiler_params=pltpu.CompilerParams(
            dimension_semantics=("parallel",),   # batch axis: megacore on v7x
            vmem_limit_bytes=vmem_limit,
        ),
        cost_estimate=cost,
    )(betas, gr, w1, b1_row, w2, b2_row)

    # Matches torch: y.view(-1, 1, NGR, NGZ) -- a free reshape, no copy.
    return y.reshape(-1, 1, NGR, NGZ)


def init_params(key):
    """Deterministic PyTorch-Linear-style init (uniform +-1/sqrt(fan_in))."""
    k1, k2, k3, k4 = jax.random.split(key, 4)
    bound1 = 1.0 / jnp.sqrt(GRID_LS)
    bound2 = 1.0 / jnp.sqrt(HIDDEN)
    # stored as (in, out) so the kernel computes x @ W (== x @ W_torch.T)
    w1 = jax.random.uniform(k1, (GRID_LS, HIDDEN), jnp.float32, -bound1, bound1)
    b1 = jax.random.uniform(k2, (HIDDEN,), jnp.float32, -bound1, bound1)
    w2 = jax.random.uniform(k3, (HIDDEN, OUT), jnp.float32, -bound2, bound2)
    b2 = jax.random.uniform(k4, (OUT,), jnp.float32, -bound2, bound2)
    beta1 = jnp.float32(1.0)   # ActF beta init = 1.0
    beta2 = jnp.float32(1.0)
    return w1, b1, beta1, w2, b2, beta2


def flux_head_ref(gr, w1, b1, beta1, w2, b2, beta2):
    h = gr @ w1 + b1
    h = h * jax.nn.sigmoid(beta1 * h)
    y = h @ w2 + b2
    y = y * jax.nn.sigmoid(beta2 * y)
    return y.reshape(-1, 1, NGR, NGZ)


if __name__ == "__main__":
    key = jax.random.PRNGKey(0)
    k_in, k_par, k_in2 = jax.random.split(key, 3)
    params = init_params(k_par)

    # --- small batch (the module's typical use) ---
    B = 8
    gr = jax.random.normal(k_in, (B, GRID_LS), jnp.float32)
    ref = flux_head_ref(gr, *params)

    # exact-divide sigmoid path: strict validation of everything else
    out_exact = jax.block_until_ready(
        flux_head_forward(gr, *params, approx_sigmoid=False))
    assert out_exact.shape == (B, 1, NGR, NGZ), out_exact.shape
    assert jnp.allclose(out_exact, ref, atol=1e-5, rtol=1e-5), "mismatch (exact, small B)"

    # default EUP approx-reciprocal path (last-bits looser tolerance)
    out = jax.block_until_ready(flux_head_forward(gr, *params))
    assert out.shape == (B, 1, NGR, NGZ), out.shape
    assert jnp.allclose(out, ref, atol=2e-3, rtol=2e-3), "mismatch (approx, small B)"

    # optional bf16 writeback (halves output HBM traffic; consumer-gated)
    out_bf16 = jax.block_until_ready(
        flux_head_forward(gr, *params, out_dtype=jnp.bfloat16))
    assert out_bf16.dtype == jnp.bfloat16
    assert jnp.allclose(out_bf16.astype(jnp.float32), ref, atol=5e-2, rtol=5e-2), \
        "mismatch (bf16 out)"

    # --- larger, non-multiple-of-block batch: multi-block grid + ragged final block ---
    B2 = 1300
    gr2 = jax.random.normal(k_in2, (B2, GRID_LS), jnp.float32)
    ref2 = flux_head_ref(gr2, *params)

    out2 = jax.block_until_ready(
        flux_head_forward(gr2, *params, block_rows=512, approx_sigmoid=False))
    assert out2.shape == (B2, 1, NGR, NGZ), out2.shape
    assert jnp.allclose(out2, ref2, atol=1e-5, rtol=1e-5), "mismatch (exact, large B)"

    out2a = jax.block_until_ready(flux_head_forward(gr2, *params, block_rows=512))
    assert jnp.allclose(out2a, ref2, atol=2e-3, rtol=2e-3), "mismatch (approx, large B)"

    print("KERNEL_OK")
</pallas_src>

<mosaic_0001>
module attributes {stable_mosaic.version = 11 : i64} {
  func.func @flux_head_kernel(%arg0: i32, %arg1: memref<2xf32, #tpu.memory_space<smem>>, %arg2: memref<8x32xf32, #tpu.memory_space<vmem>>, %arg3: memref<32x64xf32, #tpu.memory_space<vmem>>, %arg4: memref<1x64xf32, #tpu.memory_space<vmem>>, %arg5: memref<64x256xf32, #tpu.memory_space<vmem>>, %arg6: memref<1x256xf32, #tpu.memory_space<vmem>>, %arg7: memref<8x256xf32, #tpu.memory_space<vmem>>) attributes {dimension_semantics = [#tpu.dimension_semantics<parallel>], iteration_bounds = array<i64: 1>, scalar_prefetch = 1 : i64, scratch_operands = 0 : i64, tpu.core_type = #tpu.core_type<tc>, window_params = [{transform_indices = @transform_0, window_bounds = array<i64: 8, 32>}, {pipeline_mode = #tpu.pipeline_mode<synchronous>, transform_indices = @transform_1, window_bounds = array<i64: 32, 64>}, {pipeline_mode = #tpu.pipeline_mode<synchronous>, transform_indices = @transform_2, window_bounds = array<i64: 1, 64>}, {pipeline_mode = #tpu.pipeline_mode<synchronous>, transform_indices = @transform_3, window_bounds = array<i64: 64, 256>}, {pipeline_mode = #tpu.pipeline_mode<synchronous>, transform_indices = @transform_4, window_bounds = array<i64: 1, 256>}, {transform_indices = @transform_5, window_bounds = array<i64: 8, 256>}]} {
    %c0 = arith.constant 0 : index
    %0 = memref.load %arg1[%c0] : memref<2xf32, #tpu.memory_space<smem>>
    %c1 = arith.constant 1 : index
    %1 = memref.load %arg1[%c1] : memref<2xf32, #tpu.memory_space<smem>>
    %c0_0 = arith.constant 0 : index
    %c0_1 = arith.constant 0 : index
    %2 = vector.load %arg2[%c0_0, %c0_1] : memref<8x32xf32, #tpu.memory_space<vmem>>, vector<8x32xf32>
    %c0_2 = arith.constant 0 : index
    %c0_3 = arith.constant 0 : index
    %3 = vector.load %arg3[%c0_2, %c0_3] : memref<32x64xf32, #tpu.memory_space<vmem>>, vector<32x64xf32>
    %cst = arith.constant dense<0.000000e+00> : vector<8x64xf32>
    %4 = tpu.matmul %2, %3, %cst {dimension_numbers = #tpu.dot_dimension_numbers<[1], [0], [0], [1], [0, 0, 1, 1], [], []>} : vector<8x32xf32>, vector<32x64xf32>, vector<8x64xf32> -> vector<8x64xf32>
    %c0_4 = arith.constant 0 : index
    %c0_5 = arith.constant 0 : index
    %5 = vector.load %arg4[%c0_4, %c0_5] : memref<1x64xf32, #tpu.memory_space<vmem>>, vector<1x64xf32>
    %6 = vector.broadcast %5 : vector<1x64xf32> to vector<8x64xf32>
    %7 = arith.addf %4, %6 : vector<8x64xf32>
    %cst_6 = arith.constant 0.000000e+00 : f32
    %8 = arith.subf %cst_6, %0 : f32
    %9 = vector.broadcast %8 : f32 to vector<8x64xf32>
    %10 = arith.mulf %9, %7 : vector<8x64xf32>
    %11 = math.exp %10 : vector<8x64xf32>
    %cst_7 = arith.constant 1.000000e+00 : f32
    %12 = vector.broadcast %cst_7 : f32 to vector<8x64xf32>
    %13 = arith.addf %12, %11 : vector<8x64xf32>
    %14 = tpu.reciprocal %13 : vector<8x64xf32> -> vector<8x64xf32>
    %15 = arith.mulf %7, %14 : vector<8x64xf32>
    %c0_8 = arith.constant 0 : index
    %c0_9 = arith.constant 0 : index
    %16 = vector.load %arg5[%c0_8, %c0_9] : memref<64x256xf32, #tpu.memory_space<vmem>>, vector<64x256xf32>
    %cst_10 = arith.constant dense<0.000000e+00> : vector<8x256xf32>
    %17 = tpu.matmul %15, %16, %cst_10 {dimension_numbers = #tpu.dot_dimension_numbers<[1], [0], [0], [1], [0, 0, 1, 1], [], []>} : vector<8x64xf32>, vector<64x256xf32>, vector<8x256xf32> -> vector<8x256xf32>
    %c0_11 = arith.constant 0 : index
    %c0_12 = arith.constant 0 : index
    %18 = vector.load %arg6[%c0_11, %c0_12] : memref<1x256xf32, #tpu.memory_space<vmem>>, vector<1x256xf32>
    %19 = vector.broadcast %18 : vector<1x256xf32> to vector<8x256xf32>
    %20 = arith.addf %17, %19 : vector<8x256xf32>
    %cst_13 = arith.constant 0.000000e+00 : f32
    %21 = arith.subf %cst_13, %1 : f32
    %22 = vector.broadcast %21 : f32 to vector<8x256xf32>
    %23 = arith.mulf %22, %20 : vector<8x256xf32>
    %24 = math.exp %23 : vector<8x256xf32>
    %cst_14 = arith.constant 1.000000e+00 : f32
    %25 = vector.broadcast %cst_14 : f32 to vector<8x256xf32>
    %26 = arith.addf %25, %24 : vector<8x256xf32>
    %27 = tpu.reciprocal %26 : vector<8x256xf32> -> vector<8x256xf32>
    %28 = arith.mulf %20, %27 : vector<8x256xf32>
    %c0_15 = arith.constant 0 : index
    %c0_16 = arith.constant 0 : index
    %29 = vector.load %arg7[%c0_15, %c0_16] : memref<8x256xf32, #tpu.memory_space<vmem>>, vector<8x256xf32>
    tpu.vector_store %arg7[%c0_15, %c0_16], %28 {strides = array<i32>} : memref<8x256xf32, #tpu.memory_space<vmem>>, vector<8x256xf32>,
    return
  }
  func.func @transform_0(%arg0: i32, %arg1: memref<2xf32, #tpu.memory_space<smem>>) -> (i32, i32) {
    %c0_i32 = arith.constant 0 : i32
    %c0_i32_0 = arith.constant 0 : i32
    return %arg0, %c0_i32 : i32, i32
  }
  func.func @transform_1(%arg0: i32, %arg1: memref<2xf32, #tpu.memory_space<smem>>) -> (i32, i32) {
    %c0_i32 = arith.constant 0 : i32
    %c0_i32_0 = arith.constant 0 : i32
    %c0_i32_1 = arith.constant 0 : i32
    return %c0_i32, %c0_i32_0 : i32, i32
  }
  func.func @transform_2(%arg0: i32, %arg1: memref<2xf32, #tpu.memory_space<smem>>) -> (i32, i32) {
    %c0_i32 = arith.constant 0 : i32
    %c0_i32_0 = arith.constant 0 : i32
    %c0_i32_1 = arith.constant 0 : i32
    return %c0_i32, %c0_i32_0 : i32, i32
  }
  func.func @transform_3(%arg0: i32, %arg1: memref<2xf32, #tpu.memory_space<smem>>) -> (i32, i32) {
    %c0_i32 = arith.constant 0 : i32
    %c0_i32_0 = arith.constant 0 : i32
    %c0_i32_1 = arith.constant 0 : i32
    return %c0_i32, %c0_i32_0 : i32, i32
  }
  func.func @transform_4(%arg0: i32, %arg1: memref<2xf32, #tpu.memory_space<smem>>) -> (i32, i32) {
    %c0_i32 = arith.constant 0 : i32
    %c0_i32_0 = arith.constant 0 : i32
    %c0_i32_1 = arith.constant 0 : i32
    return %c0_i32, %c0_i32_0 : i32, i32
  }
  func.func @transform_5(%arg0: i32, %arg1: memref<2xf32, #tpu.memory_space<smem>>) -> (i32, i32) {
    %c0_i32 = arith.constant 0 : i32
    %c0_i32_0 = arith.constant 0 : i32
    return %arg0, %c0_i32 : i32, i32
  }
}

</mosaic_0001>

<bundles_post_ra>
// kernel: tpu_custom_call.1
= control target key start
LH: loop header
LB: loop body
LE: loop exit
PB: predicated region body
PF: predicated region fallthrough
CT: control target
= control target key end

     0   :  { %s581_s0 = inlined_call_operand.hbm [shape: f32[2], index: 0, kind: input, shape index: {}]   ;;  %s582_s1 = inlined_call_operand.hbm [shape: f32[8,32], index: 1, kind: input, shape index: {}]   ;;  %s583_s2 = inlined_call_operand.hbm [shape: f32[32,64], index: 2, kind: input, shape index: {}]   ;;  %s584_s3 = inlined_call_operand.vmem [shape: f32[1,64], index: 3, kind: input, shape index: {}]   ;;  %s585_s4 = inlined_call_operand.hbm [shape: f32[64,256], index: 4, kind: input, shape index: {}]   ;;  %s586_s5 = inlined_call_operand.vmem [shape: f32[1,256], index: 5, kind: input, shape index: {}]   ;;  %s587_s6 = inlined_call_operand.hbm [shape: f32[8,256], index: 6, kind: output, shape index: {}]  }
   0x1   :  { %s362_s23 = scalar_lea.hbm %s581_s0, 16 }
   0x2   :  { %p363_p0 = scmp.ne.s32.totalorder %s581_s0, %s362_s23  ;;  %p366_p1 = scmp.lt.u32.totalorder %s362_s23, %s581_s0 }
   0x4   :  { %p368_p2 = pnand %p366_p1, %p363_p0 }
   0x6   :  { %371 = shalt.err (!%p368_p2)  }
   0x7   :  { %s468_s28 = smov [#allocation3]  }
   0x8   :  { %12 = dma.hbm_to_smem %s581_s0, 16, %s468_s28, [#allocation2] }
   0x9   :  { %460 = dma.done.wait [#allocation2], 16 }
   0xa   :  { %461 = vsyncadd [#allocation2], 4294967280 }
   0xb   :  { %14 = sfence }
   0xc   :  { %15 = vsyncpa [#allocation5], 0 }
   0xd   :  { %16 = vsyncpa [#allocation8], 0 }
   0xe   :  { %17 = vsyncpa [#allocation6], 0  ;;  %s469_s7 = smov [#allocation7]   ;;  %s372_s11 = scalar_lea.hbm %s583_s2, 512 }
   0xf   :  { %s33_s8 = sshll.u32 %s469_s7, 4  ;;  %p373_p3 = scmp.ne.s32.totalorder %s583_s2, %s372_s11  ;;  %s34_s8 = int_to_ptr.vmem [resolvable:$true] %s33_s8 }
  0x10   :  { %p376_p4 = scmp.lt.u32.totalorder %s372_s11, %s583_s2 }
  0x12   :  { %p378_p5 = pnand %p376_p4, %p373_p3 }
  0x14   :  { %381 = shalt.err (!%p378_p5)
}
  0x15   :  { %s382_s0 = scalar_lea.vmem %s34_s8, 512  ;;  %p387_p7 = scmp.lt.s32.totalorder %s34_s8, %s34_s8 }
  0x16   :  { %p383_p6 = scmp.ne.s32.totalorder %s34_s8, %s382_s0  ;;  %p388_p8 = scmp.lt.s32.totalorder %s382_s0, %s382_s0 }
  0x18   :  { %p389_p9 = por %p388_p8, %p387_p7 }
  0x1a   :  { %p390_p10 = pnand %p389_p9, %p383_p6 }
  0x1c   :  { %393 = shalt.err (!%p390_p10)
}
  0x1d   :  { %s470_s16 = smov 128   ;;  %s471_s17 = smov 8  }
  0x1e   :  { %39 = dma.hbm_to_vmem [thread:$0]  %s583_s2, 512, %s34_s8, [#allocation8], %s470_s16, %s470_s16, %s471_s17  }
  0x1f   :  { %s472_s20 = smov [#allocation4]   ;;  %s473_s22 = smov [#allocation9]  }
  0x20   :  { %s24_s21 = sshll.u32 %s472_s20, 4  ;;  %s47_s23 = sshll.u32 %s473_s22, 4  ;;  %s25_s21 = int_to_ptr.vmem [resolvable:$true] %s24_s21  ;;  %s48_s23 = int_to_ptr.vmem [resolvable:$true] %s47_s23 }
  0x21   :  { %s394_s26 = scalar_lea.hbm %s582_s1, 128 }
  0x22   :  { %p395_p11 = scmp.ne.s32.totalorder %s582_s1, %s394_s26  ;;  %p398_p12 = scmp.lt.u32.totalorder %s394_s26, %s582_s1 }
  0x24   :  { %p400_p13 = pnand %p398_p12, %p395_p11 }
  0x26   :  { %403 = shalt.err (!%p400_p13)
}
  0x27   :  { %s404_s2 = scalar_lea.vmem %s25_s21, 128  ;;  %p409_p1 = scmp.lt.s32.totalorder %s25_s21, %s25_s21 }
  0x28   :  { %p405_p0 = scmp.ne.s32.totalorder %s25_s21, %s404_s2  ;;  %p410_p2 = scmp.lt.s32.totalorder %s404_s2, %s404_s2 }
  0x2a   :  { %p411_p3 = por %p410_p2, %p409_p1 }
  0x2c   :  { %p412_p4 = pnand %p411_p3, %p405_p0 }
  0x2e   :  { %415 = shalt.err (!%p412_p4)
}
  0x2f   :  { %27 = dma.hbm_to_vmem [thread:$0]  %s582_s1, 128, %s25_s21, [#allocation5]  }
  0x30   :  { %s416_s11 = scalar_lea.hbm %s585_s4, 2048 }
  0x31   :  { %p417_p5 = scmp.ne.s32.totalorder %s585_s4, %s416_s11  ;;  %p420_p6 = scmp.lt.u32.totalorder %s416_s11, %s585_s4 }
  0x33   :  { %p422_p7 = pnand %p420_p6, %p417_p5 }
  0x35   :  { %425 = shalt.err (!%p422_p7)
}
  0x36   :  { %s426_s0 = scalar_lea.vmem %s48_s23, 2048  ;;  %p431_p9 = scmp.lt.s32.totalorder %s48_s23, %s48_s23 }
  0x37   :  { %p427_p8 = scmp.ne.s32.totalorder %s48_s23, %s426_s0  ;;  %p432_p10 = scmp.lt.s32.totalorder %s426_s0, %s426_s0 }
  0x39   :  { %p433_p11 = por %p432_p10, %p431_p9 }
  0x3b   :  { %p434_p12 = pnand %p433_p11, %p427_p8 }
  0x3d   :  { %437 = shalt.err (!%p434_p12)
}
  0x3e   :  { %s474_s1 = smov 256   ;;  %s475_s16 = smov 16  }
  0x3f   :  { %53 = dma.hbm_to_vmem [thread:$0]  %s585_s4, 2048, %s48_s23, [#allocation8], %s474_s1, %s474_s1, %s475_s16  }
  0x40   :  { %462 = dma.done.wait [#allocation5], 128  }
  0x41   :  { %463 = vsyncadd [#allocation5], 4294967168 }
  0x42   :  { %464 = dma.done.wait [#allocation8], 2560  }
  0x43   :  { %465 = vsyncadd [#allocation8], 4294964736  ;;  %v476_v0 = vmov 0.0|0.0   ;;  %vm477_vm0 = vmmov 0   ;;  %v478_v1 = vmov 0.0   ;;  %v68_v2 = vld [vmem:[#allocation7] sm:$0xff]  ;;  %v179_v44 = vlaneseq }
  0x44   :  { %316 = vmatprep.subr.bf16.mxu0 %v476_v0  ;;  %313 = vmatprep.mubr.msk.f32.mxu0 %vm477_vm0, %v478_v1  ;;  %v69_v3 = vld [vmem:[#allocation7 + $0x8] sm:$0xff]  ;;  %v70_v4 = vld [vmem:[#allocation7 + $0x10] sm:$0xff]  ;;  %v71_v6 = vld [vmem:[#allocation7 + $0x18] sm:$0xff]  ;;  %vm79_vm1 = vcmask 261120   ;;  %s65_s4 = sld [smem:[#allocation3]]  ;;  %vm189_vm2 = vcmask 523264  }
  0x45   :  { %257 = vmatprep.mubr.f32.mxu1 %v478_v1  ;;  %v317_v5 = vpack.c.bf16 %v69_v3, %v68_v2  ;;  %v320_v7 = vpack.c.bf16 %v71_v6, %v70_v4  ;;  %v67_v8 = vld [vmem:[#allocation4] sm:$0xff]  ;;  %v162_v9 = vld [vmem:[#allocation9 + $0x8] sm:$0xff]  ;;  %v161_v12 = vld [vmem:[#allocation9] sm:$0xff]  ;;  %s296_s22 = sld [smem:[#allocation3 + $0x1]]  ;;  %v180_v45 = vshrl.u32 %v179_v44, 7 }
  0x46   :  { %v164_v10 = vld [vmem:[#allocation9 + $0x18] sm:$0xff]  ;;  %v163_v13 = vld [vmem:[#allocation9 + $0x10] sm:$0xff]  ;;  %v166_v15 = vld [vmem:[#allocation9 + $0x28] sm:$0xff] }
  0x47   :  { %318 = vmatpush3.bf16.msra.mxu0 %v317_v5  ;;  %v322_v11 = vpack.c.bf16 %v164_v10, %v162_v9  ;;  %v324_v14 = vpack.c.bf16 %v163_v13, %v161_v12  ;;  %v168_v16 = vld [vmem:[#allocation9 + $0x38] sm:$0xff]  ;;  %v165_v18 = vld [vmem:[#allocation9 + $0x20] sm:$0xff]  ;;  %v167_v19 = vld [vmem:[#allocation9 + $0x30] sm:$0xff]  ;;  %v181_v46 = vsub.s32 0, %v180_v45  ;;  %v185_v48 = vsub.s32 1, %v180_v45 }
  0x48   :  { %319 = vmatprep.subr.bf16.mxu0 %v476_v0  ;;  %v326_v17 = vpack.c.bf16 %v168_v16, %v166_v15  ;;  %v328_v20 = vpack.c.bf16 %v167_v19, %v165_v18  ;;  %v170_v21 = vld [vmem:[#allocation9 + $0x48] sm:$0xff]  ;;  %v172_v22 = vld [vmem:[#allocation9 + $0x58] sm:$0xff]  ;;  %v169_v24 = vld [vmem:[#allocation9 + $0x40] sm:$0xff] }
  0x49   :  { %323 = vmatprep.subr.bf16.mxu1 %v322_v11  ;;  %v330_v23 = vpack.c.bf16 %v172_v22, %v170_v21  ;;  %v171_v25 = vld [vmem:[#allocation9 + $0x50] sm:$0xff]  ;;  %v174_v27 = vld [vmem:[#allocation9 + $0x68] sm:$0xff]  ;;  %v176_v28 = vld [vmem:[#allocation9 + $0x78] sm:$0xff] }
  0x4a   :  { %325 = vmatpush1.bf16.msra.mxu1 %v324_v14  ;;  %v332_v26 = vpack.c.bf16 %v171_v25, %v169_v24  ;;  %v334_v29 = vpack.c.bf16 %v176_v28, %v174_v27  ;;  %v173_v30 = vld [vmem:[#allocation9 + $0x60] sm:$0xff]  ;;  %v175_v31 = vld [vmem:[#allocation9 + $0x70] sm:$0xff]  ;;  %s153_s19 = ssub.f32 0.0, %s65_s4 }
  0x4b   :  { %321 = vmatpush3.bf16.msra.mxu0 %v320_v7  ;;  %327 = vmatprep.subr.bf16.mxu1 %v326_v17  ;;  %v336_v32 = vpack.c.bf16 %v175_v31, %v173_v30  ;;  %v297_v33 = vld [vmem:[%s584_s3] ss:$0 sm:$0xff]  ;;  %s264_s24 = ssub.f32 0.0, %s296_s22 }
  0x4c   :  { %v154_v35 = vstv %s153_s19  ;;  %v177_v47 = vld [vmem:[%s586_s5] sm:$0x3]  ;;  %s479_s5 = smov [#allocation10]  }
  0x4d   :  { %v182_v49 = vrot.slane %v177_v47, %v181_v46  ;;  %v186_v50 = vrot.slane %v177_v47, %v185_v48  ;;  %v265_v52 = vstv %s264_s24  ;;  %s286_s25 = sshll.u32 %s479_s5, 4  ;;  %s287_s25 = int_to_ptr.vmem [resolvable:$true] %s286_s25 }
  0x4e   :  { %314 = vmatmul.mubr.msk.f32.vlgmr.msra.gmra.mrb[0].mxu0 %vm79_vm1, %v67_v8  ;;  %329 = vmatpush1.bf16.msra.mxu1 %v328_v20  ;;  %s438_s26 = scalar_lea.vmem %s287_s25, 256  ;;  %p443_p0 = scmp.lt.s32.totalorder %s287_s25, %s287_s25 }
  0x4f   :  { %331 = vmatprep.subr.bf16.mxu1 %v330_v23  ;;  %p439_p13 = scmp.ne.s32.totalorder %s287_s25, %s438_s26  ;;  %p444_p1 = scmp.lt.s32.totalorder %s438_s26, %s438_s26 }
  0x51   :  { %p445_p2 = por %p444_p1, %p443_p0 }
  0x52   :  { %333 = vmatpush1.bf16.msra.mxu1 %v332_v26 }
  0x53   :  { %335 = vmatprep.subr.bf16.mxu1 %v334_v29  ;;  %p446_p3 = pnand %p445_p2, %p439_p13 }
  0x56   :  { %337 = vmatpush1.bf16.msra.mxu1 %v336_v32 }
 0x121   :  { %v149_v34 = vpop.f32.mrb[0].mxu0 }
 0x122   :  { %v150_v36 = vadd.f32 %v297_v33, %v149_v34  ;;  %v315_v37 = vpop.f32.mrb[1].mxu0 }
 0x124   :  { %v155_v38 = vmul.f32 %v154_v35, %v150_v36 }
 0x126   :  { %v156_v39 = vmul.f32 1.442695, %v155_v38 }
 0x128   :  { %350 = vpow2.f32 %v156_v39 }
 0x132   :  { %v351_v40 = vpop.eup %350 }
 0x133   :  { %v158_v41 = vadd.f32 1.0, %v351_v40 }
 0x135   :  { %352 = vrcp.f32 %v158_v41 }
 0x13f   :  { %v353_v42 = vpop.eup %352 }
 0x140   :  { %v160_v43 = vmul.f32 %v353_v42, %v150_v36 }
 0x142   :  { %299 = vmatmul.mubr.msk.f32.vlgmr.msra.gmra.mrb[0].mxu1 %vm189_vm2, %v160_v43 }
 0x215   :  { %v259_v51 = vpop.f32.mrb[0].mxu1 }
 0x216   :  { %v260_v53 = vadd.f32 %v259_v51, %v182_v49  ;;  %v261_v54 = vpop.f32.mrb[1].mxu1 }
 0x217   :  { %v262_v55 = vadd.f32 %v261_v54, %v186_v50 }
 0x218   :  { %v266_v56 = vmul.f32 %v265_v52, %v260_v53 }
 0x219   :  { %v267_v57 = vmul.f32 %v265_v52, %v262_v55 }
 0x21a   :  { %v268_v58 = vmul.f32 1.442695, %v266_v56 }
 0x21b   :  { %v270_v59 = vmul.f32 1.442695, %v267_v57 }
 0x21c   :  { %354 = vpow2.f32 %v268_v58 }
 0x21d   :  { %356 = vpow2.f32 %v270_v59 }
 0x226   :  { %v355_v60 = vpop.eup %354 }
 0x227   :  { %v357_v61 = vpop.eup %356  ;;  %v272_v62 = vadd.f32 1.0, %v355_v60 }
 0x228   :  { %v273_v63 = vadd.f32 1.0, %v357_v61 }
 0x229   :  { %358 = vrcp.f32 %v272_v62 }
 0x22a   :  { %360 = vrcp.f32 %v273_v63 }
 0x233   :  { %v359_v0 = vpop.eup %358 }
 0x234   :  { %v361_v1 = vpop.eup %360  ;;  %v276_v2 = vmul.f32 %v359_v0, %v260_v53 }
 0x235   :  { %v277_v3 = vmul.f32 %v361_v1, %v262_v55 }
 0x236   :  { %278 = vst [vmem:[#allocation10] sm:$0xff] %v276_v2 }
 0x237   :  { %279 = vst [vmem:[#allocation10 + $0x8] sm:$0xff] %v277_v3 }
 0x238   :  { %449 = shalt.err (!%p446_p3)
}
 0x239   :  { %s450_s29 = scalar_lea.hbm %s587_s6, 256 }
 0x23a   :  { %p451_p4 = scmp.ne.s32.totalorder %s587_s6, %s450_s29  ;;  %p454_p5 = scmp.lt.u32.totalorder %s450_s29, %s587_s6 }
 0x23c   :  { %p456_p6 = pnand %p454_p5, %p451_p4 }
 0x23e   :  { %459 = shalt.err (!%p456_p6)
}
 0x23f   :  { %289 = dma.vmem_to_hbm [thread:$0]  %s287_s25, 256, %s587_s6, [#allocation6]  }
 0x240   :  { %466 = dma.done.wait [#allocation6], 256  }
 0x241   :  { %467 = vsyncadd [#allocation6], 4294967040 }
 0x242   :  { %293 = vsyncpa [#allocation5], 1 }
 0x243   :  { %294 = vsyncpa [#allocation8], 1 }
 0x244   :  { %295 = vsyncpa [#allocation6], 1 }

</bundles_post_ra>
